<compile_context>
chip_gen: v6e
topology: v6e:2x2x1
jax: 0.10.0
libtpu: 0.0.40
codegen_flags: <defaults>
</compile_context>

<pallas_src>
import jax
import jax.numpy as jnp
import numpy as np
from jax.experimental import pallas as pl
from jax.experimental.pallas import tpu as pltpu


def _round_up(x, m):
    return (x + m - 1) // m * m


def _make_textcnn_kernel(tb, seq_len, d, k_max, c_pad):
    """Fused kernel for a fixed (static) configuration. TB samples per grid step."""
    TB, S, D = tb, seq_len, d
    N = TB * S  # flattened time axis

    def kernel(x_ref, mask_ref, wc_ref, bc_ref, w1_ref, b1_ref, w2_ref, b2_ref, out_ref):
        # (TB, S, D) -> (TB*S, D); S is a multiple of 8 sublanes so this is cheap.
        x = x_ref[...].reshape(N, D)

        # Unfold (im2col) via XLU rolls on the flattened time axis: shift N-i shifts rows
        # up by i.  Cross-sample / wrap-around rows only land at t >= S-i within a sample
        # and are removed by the post-ReLU zero mask (see header comment).
        parts = [x] + [pltpu.roll(x, shift=N - i, axis=0) for i in range(1, k_max)]
        x_unf = jnp.concatenate(parts, axis=1) if len(parts) > 1 else x  # (N, k_max*D)

        # Single fused conv matmul over all filter sizes & taps (M=N, K=k_max*D).
        conv = jnp.dot(x_unf, wc_ref[...], preferred_element_type=jnp.float32)  # (N, c_pad)
        conv = jnp.maximum(conv + bc_ref[...], 0.0)   # bias + ReLU (>= 0)

        # Hoisted 0/1 time-validity mask. ReLU output >= 0, so 0 is a valid neutral
        # element for the max-pool; padded channels are all-zero anyway.
        conv = conv * mask_ref[...]

        # Per-sample max-pool over time.
        pooled = jnp.max(conv.reshape(TB, S, c_pad), axis=1)          # (TB, c_pad)

        # dropout: identity in eval mode.
        # Batched FC1 + ReLU, FC2 + Sigmoid (each MXU row is a distinct sample).
        h = jnp.dot(pooled, w1_ref[...], preferred_element_type=jnp.float32) + b1_ref[...]
        h = jnp.maximum(h, 0.0)                                       # (TB, H_pad)
        # dropout: identity in eval mode.
        logits = jnp.dot(h, w2_ref[...], preferred_element_type=jnp.float32) + b2_ref[...]

        # Lane-dense write: full (TB, O_pad) row; only column 0 is the real output.
        out_ref[...] = jax.nn.sigmoid(logits)

    return kernel


def textcnn_forward(x_emb, conv_ws, conv_bs, fc1_w, fc1_b, fc2_w, fc2_b, filter_sizes):
    """x_emb: (B, S, D) float32 embedded questions. conv_ws[idx]: (k, D, F) (pre-transposed
    from PyTorch's (F, 1, k, D)); fc weights pre-transposed to (in, out)."""
    B, S, D = x_emb.shape
    F = conv_ws[0].shape[-1]
    n_k = len(filter_sizes)
    k_max = max(filter_sizes)
    f32 = jnp.float32

    C = n_k * F                          # real conv-channel count
    C_pad = _round_up(max(C, 128), 128)  # lane-pad conv channels
    H = fc1_w.shape[1]                   # fc1 hidden (= num_filters)
    H_pad = _round_up(max(H, 128), 128)
    O_pad = 128                          # lane-padded fc2 output (only col 0 is real)
    K_big = k_max * D                    # fused contraction dim

    # ---- batch blocking: TB samples per grid step so M = TB*S ~ 256 fills the v6e/v7x
    # MXU (use TB*S ~ 128 on v5e). Tiny demo batches fall back to a single full block. ----
    TB = max(1, min(256 // max(S, 1), B))
    if TB % 8 != 0:
        TB = B          # keep output block dims == full array dims for small batches
    B_pad = _round_up(B, TB)
    grid = B_pad // TB
    if B_pad != B:
        x_emb = jnp.concatenate(
            [x_emb, jnp.zeros((B_pad - B, S, D), x_emb.dtype)], axis=0)

    # ---- pack / pad parameters + hoisted mask in the wrapper (one-time prep) ----
    wc = jnp.zeros((K_big, C_pad), f32)
    bc = jnp.zeros((1, C_pad), f32)
    for idx, k in enumerate(filter_sizes):
        wc = wc.at[: k * D, idx * F:(idx + 1) * F].set(conv_ws[idx].reshape(k * D, F))
        bc = bc.at[0, idx * F:(idx + 1) * F].set(conv_bs[idx][0])
    w1 = jnp.zeros((C_pad, H_pad), f32).at[:C, :H].set(fc1_w)
    b1 = jnp.zeros((1, H_pad), f32).at[0, :H].set(fc1_b[0])
    w2 = jnp.zeros((H_pad, O_pad), f32).at[:H, :1].set(fc2_w)
    b2 = jnp.zeros((1, O_pad), f32).at[0, :1].set(fc2_b.reshape(-1)[:1])

    # Hoisted time-validity mask (1.0 where conv position t is valid for that filter's
    # channel block, 0.0 on the invalid tail), tiled over the flattened (TB*S) time axis.
    mask_np = np.ones((S, C_pad), np.float32)
    for idx, k in enumerate(filter_sizes):
        mask_np[S - k + 1:, idx * F:(idx + 1) * F] = 0.0
    mask = jnp.asarray(np.tile(mask_np, (TB, 1)))              # (TB*S, C_pad)

    kernel = _make_textcnn_kernel(TB, S, D, k_max, C_pad)

    flops = 2 * B_pad * (S * K_big * C_pad + C_pad * H_pad + H_pad * O_pad)
    bytes_accessed = 4 * (B_pad * S * D + wc.size + bc.size + w1.size + b1.size
                          + w2.size + b2.size + mask.size + B_pad * O_pad)

    out = pl.pallas_call(
        kernel,
        out_shape=jax.ShapeDtypeStruct((B_pad, O_pad), f32),
        grid_spec=pltpu.PrefetchScalarGridSpec(
            num_scalar_prefetch=0,
            grid=(grid,),
            in_specs=[
                pl.BlockSpec((TB, S, D), lambda b: (b, 0, 0)),       # x (TB samples)
                pl.BlockSpec((TB * S, C_pad), lambda b: (0, 0)),     # hoisted time mask
                pl.BlockSpec((K_big, C_pad), lambda b: (0, 0)),      # fused conv weight
                pl.BlockSpec((1, C_pad), lambda b: (0, 0)),          # fused conv bias
                pl.BlockSpec((C_pad, H_pad), lambda b: (0, 0)),      # fc1 weight (padded)
                pl.BlockSpec((1, H_pad), lambda b: (0, 0)),          # fc1 bias (padded)
                pl.BlockSpec((H_pad, O_pad), lambda b: (0, 0)),      # fc2 weight (padded)
                pl.BlockSpec((1, O_pad), lambda b: (0, 0)),          # fc2 bias (padded)
            ],
            out_specs=pl.BlockSpec((TB, O_pad), lambda b: (b, 0)),   # lane-dense output
        ),
        compiler_params=pltpu.CompilerParams(dimension_semantics=("parallel",)),
        cost_estimate=pl.CostEstimate(flops=int(flops),
                                      transcendentals=int(B_pad * O_pad),
                                      bytes_accessed=int(bytes_accessed)),
    )(x_emb.astype(f32), mask, wc, bc, w1, b1, w2, b2)
    return out[:B, :1]


def _reference_forward(x_emb, conv_ws, conv_bs, fc1_w, fc1_b, fc2_w, fc2_b, filter_sizes):
    """Pure-jnp reference mirroring the PyTorch forward (eval mode)."""
    B, S, D = x_emb.shape
    pooled = []
    for idx, k in enumerate(filter_sizes):
        L = S - k + 1
        w, b = conv_ws[idx], conv_bs[idx]
        acc = jnp.zeros((B, L, w.shape[-1]), jnp.float32)
        for i in range(k):
            acc = acc + jnp.einsum('bld,df->blf', x_emb[:, i:i + L, :], w[i])
        acc = jax.nn.relu(acc + b[None])
        pooled.append(jnp.max(acc, axis=1))
    feat = jnp.concatenate(pooled, axis=1)
    h = jax.nn.relu(feat @ fc1_w + fc1_b)
    return jax.nn.sigmoid(h @ fc2_w + fc2_b)


if __name__ == "__main__":
    # Small synthetic config consistent with the module.
    vocab_size = 100
    embed_dim = 32        # d
    seq_len = 16          # question length
    batch = 2
    num_filters = 8
    filter_sizes = (2, 3, 4)

    key = jax.random.PRNGKey(0)
    keys = jax.random.split(key, 16)

    # Deterministic parameter init (synthetic, not a checkpoint).
    emb_table = jax.random.normal(keys[0], (vocab_size, embed_dim), jnp.float32) * 0.1
    questions = jax.random.randint(keys[1], (batch, seq_len), 0, vocab_size)

    conv_ws, conv_bs = [], []
    for i, k in enumerate(filter_sizes):
        # PyTorch conv weight is (F, 1, k, D); stored here pre-transposed as (k, D, F).
        conv_ws.append(jax.random.normal(keys[2 + i], (k, embed_dim, num_filters),
                                         jnp.float32) * 0.1)
        conv_bs.append(jax.random.normal(keys[6 + i], (1, num_filters), jnp.float32) * 0.1)

    in_dim = num_filters * len(filter_sizes)
    # PyTorch Linear weight is (out, in); stored here pre-transposed as (in, out).
    fc1_w = jax.random.normal(keys[10], (in_dim, num_filters), jnp.float32) * 0.1
    fc1_b = jax.random.normal(keys[11], (1, num_filters), jnp.float32) * 0.1
    fc2_w = jax.random.normal(keys[12], (num_filters, 1), jnp.float32) * 0.1
    fc2_b = jax.random.normal(keys[13], (1, 1), jnp.float32) * 0.1

    # Embedding lookup (glue in plain JAX).
    # TODO(synk): fuse this gather into the kernel via scalar-prefetched token ids.
    x_emb = jnp.take(emb_table, questions, axis=0).astype(jnp.float32)   # (B, S, D)

    out = textcnn_forward(x_emb, conv_ws, conv_bs, fc1_w, fc1_b, fc2_w, fc2_b, filter_sizes)
    out = jax.block_until_ready(out)

    ref = jax.block_until_ready(
        _reference_forward(x_emb, conv_ws, conv_bs, fc1_w, fc1_b, fc2_w, fc2_b, filter_sizes))

    assert out.shape == (batch, 1), out.shape
    np.testing.assert_allclose(np.asarray(out), np.asarray(ref), rtol=1e-5, atol=1e-5)
    print("KERNEL_OK")
</pallas_src>

<mosaic_0001>
module attributes {stable_mosaic.version = 11 : i64} {
  func.func @kernel(%arg0: i32, %arg1: memref<2x16x32xf32, #tpu.memory_space<vmem>>, %arg2: memref<32x128xf32, #tpu.memory_space<vmem>>, %arg3: memref<128x128xf32, #tpu.memory_space<vmem>>, %arg4: memref<1x128xf32, #tpu.memory_space<vmem>>, %arg5: memref<128x128xf32, #tpu.memory_space<vmem>>, %arg6: memref<1x128xf32, #tpu.memory_space<vmem>>, %arg7: memref<128x128xf32, #tpu.memory_space<vmem>>, %arg8: memref<1x128xf32, #tpu.memory_space<vmem>>, %arg9: memref<2x128xf32, #tpu.memory_space<vmem>>) attributes {dimension_semantics = [#tpu.dimension_semantics<parallel>], iteration_bounds = array<i64: 1>, scalar_prefetch = 0 : i64, scratch_operands = 0 : i64, tpu.core_type = #tpu.core_type<tc>, window_params = [{transform_indices = @transform_0, window_bounds = array<i64: 2, 16, 32>}, {pipeline_mode = #tpu.pipeline_mode<synchronous>, transform_indices = @transform_1, window_bounds = array<i64: 32, 128>}, {pipeline_mode = #tpu.pipeline_mode<synchronous>, transform_indices = @transform_2, window_bounds = array<i64: 128, 128>}, {pipeline_mode = #tpu.pipeline_mode<synchronous>, transform_indices = @transform_3, window_bounds = array<i64: 1, 128>}, {pipeline_mode = #tpu.pipeline_mode<synchronous>, transform_indices = @transform_4, window_bounds = array<i64: 128, 128>}, {pipeline_mode = #tpu.pipeline_mode<synchronous>, transform_indices = @transform_5, window_bounds = array<i64: 1, 128>}, {pipeline_mode = #tpu.pipeline_mode<synchronous>, transform_indices = @transform_6, window_bounds = array<i64: 128, 128>}, {pipeline_mode = #tpu.pipeline_mode<synchronous>, transform_indices = @transform_7, window_bounds = array<i64: 1, 128>}, {transform_indices = @transform_8, window_bounds = array<i64: 2, 128>}]} {
    %c0 = arith.constant 0 : index
    %c0_0 = arith.constant 0 : index
    %c0_1 = arith.constant 0 : index
    %0 = vector.load %arg1[%c0, %c0_0, %c0_1] : memref<2x16x32xf32, #tpu.memory_space<vmem>>, vector<2x16x32xf32>
    %1 = vector.shape_cast %0 : vector<2x16x32xf32> to vector<32x32xf32>
    %c31_i32 = arith.constant 31 : i32
    %2 = tpu.dynamic_rotate %1 by %c31_i32 dim 0 : vector<32x32xf32>, i32 -> vector<32x32xf32>
    %c30_i32 = arith.constant 30 : i32
    %3 = tpu.dynamic_rotate %1 by %c30_i32 dim 0 : vector<32x32xf32>, i32 -> vector<32x32xf32>
    %c29_i32 = arith.constant 29 : i32
    %4 = tpu.dynamic_rotate %1 by %c29_i32 dim 0 : vector<32x32xf32>, i32 -> vector<32x32xf32>
    %5 = tpu.concatenate %1, %2, %3, %4 in 1 : vector<32x32xf32>, vector<32x32xf32>, vector<32x32xf32>, vector<32x32xf32> -> vector<32x128xf32>
    %c0_2 = arith.constant 0 : index
    %c0_3 = arith.constant 0 : index
    %6 = vector.load %arg3[%c0_2, %c0_3] : memref<128x128xf32, #tpu.memory_space<vmem>>, vector<128x128xf32>
    %cst = arith.constant dense<0.000000e+00> : vector<32x128xf32>
    %7 = tpu.matmul %5, %6, %cst {dimension_numbers = #tpu.dot_dimension_numbers<[1], [0], [0], [1], [0, 0, 1, 1], [], []>} : vector<32x128xf32>, vector<128x128xf32>, vector<32x128xf32> -> vector<32x128xf32>
    %c0_4 = arith.constant 0 : index
    %c0_5 = arith.constant 0 : index
    %8 = vector.load %arg4[%c0_4, %c0_5] : memref<1x128xf32, #tpu.memory_space<vmem>>, vector<1x128xf32>
    %9 = vector.broadcast %8 : vector<1x128xf32> to vector<32x128xf32>
    %10 = arith.addf %7, %9 : vector<32x128xf32>
    %cst_6 = arith.constant 0.000000e+00 : f32
    %11 = vector.broadcast %cst_6 : f32 to vector<32x128xf32>
    %12 = arith.maximumf %10, %11 : vector<32x128xf32>
    %c0_7 = arith.constant 0 : index
    %c0_8 = arith.constant 0 : index
    %13 = vector.load %arg2[%c0_7, %c0_8] : memref<32x128xf32, #tpu.memory_space<vmem>>, vector<32x128xf32>
    %14 = arith.mulf %12, %13 : vector<32x128xf32>
    %15 = vector.shape_cast %14 : vector<32x128xf32> to vector<2x16x128xf32>
    %cst_9 = arith.constant dense<0xFF800000> : vector<2x128xf32>
    %16 = vector.multi_reduction <maximumf>, %15, %cst_9 [1] : vector<2x16x128xf32> to vector<2x128xf32>
    %c0_10 = arith.constant 0 : index
    %c0_11 = arith.constant 0 : index
    %17 = vector.load %arg5[%c0_10, %c0_11] : memref<128x128xf32, #tpu.memory_space<vmem>>, vector<128x128xf32>
    %cst_12 = arith.constant dense<0.000000e+00> : vector<2x128xf32>
    %18 = tpu.matmul %16, %17, %cst_12 {dimension_numbers = #tpu.dot_dimension_numbers<[1], [0], [0], [1], [0, 0, 1, 1], [], []>} : vector<2x128xf32>, vector<128x128xf32>, vector<2x128xf32> -> vector<2x128xf32>
    %c0_13 = arith.constant 0 : index
    %c0_14 = arith.constant 0 : index
    %19 = vector.load %arg6[%c0_13, %c0_14] : memref<1x128xf32, #tpu.memory_space<vmem>>, vector<1x128xf32>
    %20 = vector.broadcast %19 : vector<1x128xf32> to vector<2x128xf32>
    %21 = arith.addf %18, %20 : vector<2x128xf32>
    %cst_15 = arith.constant 0.000000e+00 : f32
    %22 = vector.broadcast %cst_15 : f32 to vector<2x128xf32>
    %23 = arith.maximumf %21, %22 : vector<2x128xf32>
    %c0_16 = arith.constant 0 : index
    %c0_17 = arith.constant 0 : index
    %24 = vector.load %arg7[%c0_16, %c0_17] : memref<128x128xf32, #tpu.memory_space<vmem>>, vector<128x128xf32>
    %cst_18 = arith.constant dense<0.000000e+00> : vector<2x128xf32>
    %25 = tpu.matmul %23, %24, %cst_18 {dimension_numbers = #tpu.dot_dimension_numbers<[1], [0], [0], [1], [0, 0, 1, 1], [], []>} : vector<2x128xf32>, vector<128x128xf32>, vector<2x128xf32> -> vector<2x128xf32>
    %c0_19 = arith.constant 0 : index
    %c0_20 = arith.constant 0 : index
    %26 = vector.load %arg8[%c0_19, %c0_20] : memref<1x128xf32, #tpu.memory_space<vmem>>, vector<1x128xf32>
    %27 = vector.broadcast %26 : vector<1x128xf32> to vector<2x128xf32>
    %28 = arith.addf %25, %27 : vector<2x128xf32>
    %29 = arith.negf %28 : vector<2x128xf32>
    %30 = math.exp %29 : vector<2x128xf32>
    %cst_21 = arith.constant 1.000000e+00 : f32
    %31 = vector.broadcast %cst_21 : f32 to vector<2x128xf32>
    %32 = arith.addf %31, %30 : vector<2x128xf32>
    %33 = arith.divf %31, %32 : vector<2x128xf32>
    %c0_22 = arith.constant 0 : index
    %c0_23 = arith.constant 0 : index
    %34 = vector.load %arg9[%c0_22, %c0_23] : memref<2x128xf32, #tpu.memory_space<vmem>>, vector<2x128xf32>
    tpu.vector_store %arg9[%c0_22, %c0_23], %33 {strides = array<i32>} : memref<2x128xf32, #tpu.memory_space<vmem>>, vector<2x128xf32>,
    return
  }
  func.func @transform_0(%arg0: i32) -> (i32, i32, i32) {
    %c0_i32 = arith.constant 0 : i32
    %c0_i32_0 = arith.constant 0 : i32
    %c0_i32_1 = arith.constant 0 : i32
    return %arg0, %c0_i32, %c0_i32_0 : i32, i32, i32
  }
  func.func @transform_1(%arg0: i32) -> (i32, i32) {
    %c0_i32 = arith.constant 0 : i32
    %c0_i32_0 = arith.constant 0 : i32
    %c0_i32_1 = arith.constant 0 : i32
    return %c0_i32, %c0_i32_0 : i32, i32
  }
  func.func @transform_2(%arg0: i32) -> (i32, i32) {
    %c0_i32 = arith.constant 0 : i32
    %c0_i32_0 = arith.constant 0 : i32
    %c0_i32_1 = arith.constant 0 : i32
    return %c0_i32, %c0_i32_0 : i32, i32
  }
  func.func @transform_3(%arg0: i32) -> (i32, i32) {
    %c0_i32 = arith.constant 0 : i32
    %c0_i32_0 = arith.constant 0 : i32
    %c0_i32_1 = arith.constant 0 : i32
    return %c0_i32, %c0_i32_0 : i32, i32
  }
  func.func @transform_4(%arg0: i32) -> (i32, i32) {
    %c0_i32 = arith.constant 0 : i32
    %c0_i32_0 = arith.constant 0 : i32
    %c0_i32_1 = arith.constant 0 : i32
    return %c0_i32, %c0_i32_0 : i32, i32
  }
  func.func @transform_5(%arg0: i32) -> (i32, i32) {
    %c0_i32 = arith.constant 0 : i32
    %c0_i32_0 = arith.constant 0 : i32
    %c0_i32_1 = arith.constant 0 : i32
    return %c0_i32, %c0_i32_0 : i32, i32
  }
  func.func @transform_6(%arg0: i32) -> (i32, i32) {
    %c0_i32 = arith.constant 0 : i32
    %c0_i32_0 = arith.constant 0 : i32
    %c0_i32_1 = arith.constant 0 : i32
    return %c0_i32, %c0_i32_0 : i32, i32
  }
  func.func @transform_7(%arg0: i32) -> (i32, i32) {
    %c0_i32 = arith.constant 0 : i32
    %c0_i32_0 = arith.constant 0 : i32
    %c0_i32_1 = arith.constant 0 : i32
    return %c0_i32, %c0_i32_0 : i32, i32
  }
  func.func @transform_8(%arg0: i32) -> (i32, i32) {
    %c0_i32 = arith.constant 0 : i32
    %c0_i32_0 = arith.constant 0 : i32
    return %arg0, %c0_i32 : i32, i32
  }
}

</mosaic_0001>

<bundles_post_ra>
// kernel: tpu_custom_call.1
= control target key start
LH: loop header
LB: loop body
LE: loop exit
PB: predicated region body
PF: predicated region fallthrough
CT: control target
= control target key end

     0   :  { %13 = vsyncpa [#allocation3], 0  ;;  %s1069_s0 = inlined_call_operand.hbm [shape: f32[2,16,32], index: 0, kind: input, shape index: {}]   ;;  %s1070_s1 = inlined_call_operand.hbm [shape: f32[32,128], index: 1, kind: input, shape index: {}]   ;;  %s1071_s2 = inlined_call_operand.hbm [shape: f32[128,128], index: 2, kind: input, shape index: {}]   ;;  %s1072_s3 = inlined_call_operand.vmem [shape: f32[1,128], index: 3, kind: input, shape index: {}]   ;;  %s1073_s4 = inlined_call_operand.hbm [shape: f32[128,128], index: 4, kind: input, shape index: {}]   ;;  %s1074_s5 = inlined_call_operand.vmem [shape: f32[1,128], index: 5, kind: input, shape index: {}]   ;;  %s1075_s6 = inlined_call_operand.hbm [shape: f32[128,128], index: 6, kind: input, shape index: {}]   ;;  %s1076_s7 = inlined_call_operand.vmem [shape: f32[1,128], index: 7, kind: input, shape index: {}]   ;;  %s1077_s8 = inlined_call_operand.hbm [shape: f32[2,128], index: 8, kind: output, shape index: {}]  }
   0x1   :  { %14 = vsyncpa [#allocation6], 0 }
   0x2   :  { %15 = vsyncpa [#allocation9], 0 }
   0x3   :  { %16 = vsyncpa [#allocation4], 0  ;;  %s885_s27 = smov [#allocation5]   ;;  %s886_s29 = smov [#allocation8]  }
   0x4   :  { %s34_s28 = sshll.u32 %s885_s27, 4  ;;  %s60_s30 = sshll.u32 %s886_s29, 4  ;;  %s35_s28 = int_to_ptr.vmem [resolvable:$true] %s34_s28  ;;  %s61_s30 = int_to_ptr.vmem [resolvable:$true] %s60_s30 }
   0x5   :  { %s765_s9 = scalar_lea.vmem %s35_s28, 512  ;;  %p770_p1 = scmp.lt.s32.totalorder %s35_s28, %s35_s28 }
   0x6   :  { %p766_p0 = scmp.ne.s32.totalorder %s35_s28, %s765_s9  ;;  %p771_p2 = scmp.lt.s32.totalorder %s765_s9, %s765_s9 }
   0x8   :  { %p772_p3 = por %p771_p2, %p770_p1 }
   0xa   :  { %p773_p4 = pnand %p772_p3, %p766_p0 }
   0xc   :  { %776 = shalt.err (!%p773_p4)
}
   0xd   :  { %s887_s10 = smov 128   ;;  %s888_s11 = smov 8  }
   0xe   :  { %40 = dma.hbm_to_vmem [thread:$0]  %s1070_s1, 512, %s35_s28, [#allocation6], %s887_s10, %s887_s10, %s888_s11  }
   0xf   :  { %s785_s14 = scalar_lea.vmem %s61_s30, 2048  ;;  %p790_p6 = scmp.lt.s32.totalorder %s61_s30, %s61_s30 }
  0x10   :  { %p786_p5 = scmp.ne.s32.totalorder %s61_s30, %s785_s14  ;;  %p791_p7 = scmp.lt.s32.totalorder %s785_s14, %s785_s14 }
  0x12   :  { %p792_p8 = por %p791_p7, %p790_p6 }
  0x14   :  { %p793_p9 = pnand %p792_p8, %p786_p5 }
  0x16   :  { %796 = shalt.err (!%p793_p9)
}
  0x17   :  { %66 = dma.hbm_to_vmem [thread:$0]  %s1073_s4, 2048, %s61_s30, [#allocation9], %s887_s10, %s887_s10, %s888_s11  }
  0x18   :  { %s889_s17 = smov [#allocation2]   ;;  %s890_s19 = smov [#allocation7]  }
  0x19   :  { %s22_s18 = sshll.u32 %s889_s17, 4  ;;  %s46_s20 = sshll.u32 %s890_s19, 4  ;;  %s23_s18 = int_to_ptr.vmem [resolvable:$true] %s22_s18  ;;  %s47_s20 = int_to_ptr.vmem [resolvable:$true] %s46_s20 }
  0x1a   :  { %s805_s1 = scalar_lea.vmem %s23_s18, 512  ;;  %p810_p11 = scmp.lt.s32.totalorder %s23_s18, %s23_s18 }
  0x1b   :  { %p806_p10 = scmp.ne.s32.totalorder %s23_s18, %s805_s1  ;;  %p811_p12 = scmp.lt.s32.totalorder %s805_s1, %s805_s1 }
  0x1d   :  { %p812_p13 = por %p811_p12, %p810_p11 }
  0x1f   :  { %p813_p0 = pnand %p812_p13, %p806_p10 }
  0x21   :  { %816 = shalt.err (!%p813_p0)
}
  0x22   :  { %28 = dma.hbm_to_vmem [thread:$0]  %s1069_s0, 512, %s23_s18, [#allocation3], %s887_s10, %s887_s10, %s888_s11  }
  0x23   :  { %s825_s4 = scalar_lea.vmem %s47_s20, 2048  ;;  %p830_p2 = scmp.lt.s32.totalorder %s47_s20, %s47_s20 }
  0x24   :  { %p826_p1 = scmp.ne.s32.totalorder %s47_s20, %s825_s4  ;;  %p831_p3 = scmp.lt.s32.totalorder %s825_s4, %s825_s4 }
  0x26   :  { %p832_p4 = por %p831_p3, %p830_p2 }
  0x28   :  { %p833_p5 = pnand %p832_p4, %p826_p1 }
  0x2a   :  { %836 = shalt.err (!%p833_p5)
}
  0x2b   :  { %52 = dma.hbm_to_vmem [thread:$0]  %s1071_s2, 2048, %s47_s20, [#allocation6], %s887_s10, %s887_s10, %s888_s11  }
  0x2c   :  { %s891_s25 = smov [#allocation10]  }
  0x2d   :  { %s74_s26 = sshll.u32 %s891_s25, 4  ;;  %s75_s26 = int_to_ptr.vmem [resolvable:$true] %s74_s26 }
  0x2e   :  { %s845_s27 = scalar_lea.vmem %s75_s26, 2048  ;;  %p850_p7 = scmp.lt.s32.totalorder %s75_s26, %s75_s26 }
  0x2f   :  { %p846_p6 = scmp.ne.s32.totalorder %s75_s26, %s845_s27  ;;  %p851_p8 = scmp.lt.s32.totalorder %s845_s27, %s845_s27 }
  0x31   :  { %p852_p9 = por %p851_p8, %p850_p7 }
  0x33   :  { %p853_p10 = pnand %p852_p9, %p846_p6 }
  0x35   :  { %856 = shalt.err (!%p853_p10)
}
  0x36   :  { %80 = dma.hbm_to_vmem [thread:$0]  %s1075_s6, 2048, %s75_s26, [#allocation9], %s887_s10, %s887_s10, %s888_s11  }
  0x37   :  { %877 = dma.done.wait [#allocation3], 512  }
  0x38   :  { %878 = vsyncadd [#allocation3], 4294966784 }
  0x39   :  { %879 = dma.done.wait [#allocation6], 2560  }
  0x3a   :  { %880 = vsyncadd [#allocation6], 4294964736 }
  0x3b   :  { %881 = dma.done.wait [#allocation9], 4096  }
  0x3c   :  { %882 = vsyncadd [#allocation9], 4294963200  ;;  %v106_v0 = vlaneseq  ;;  %v973_v2 = vld [vmem:[#allocation2] sm:$0xff]  ;;  %v975_v3 = vld [vmem:[#allocation2 + $0x8] sm:$0xff]  ;;  %s892_s2 = smov 32   ;;  %s893_s6 = smov 96  }
  0x3d   :  { %v977_v4 = vld [vmem:[#allocation2 + $0x10] sm:$0xff]  ;;  %v102_v5 = vrot.slane %v973_v2, 1  ;;  %v103_v6 = vrot.slane %v975_v3, 1  ;;  %v122_v8 = vrot.slane %v973_v2, 3  ;;  %v983_v9 = vld [vmem:[#allocation2 + $0x18] sm:$0xff]  ;;  %v123_v11 = vrot.slane %v975_v3, 3 }
  0x3e   :  { %v107_v1 = vshrl.u32 %v106_v0, 7  ;;  %v104_v7 = vrot.slane %v977_v4, 1  ;;  %v209_v10 = vld [vmem:[#allocation7 + $0x78] sm:$0xff]  ;;  %v124_v12 = vrot.slane %v977_v4, 3  ;;  %v113_v13 = vrot.slane %v973_v2, 2  ;;  %v208_v15 = vld [vmem:[#allocation7 + $0x70] sm:$0xff] }
  0x3f   :  { %v114_v14 = vrot.slane %v975_v3, 2  ;;  %602 = vmatprep.subr.mxu0 %v209_v10  ;;  %v115_v18 = vrot.slane %v977_v4, 2  ;;  %v105_v19 = vrot.slane %v983_v9, 1  ;;  %v207_v20 = vld [vmem:[#allocation7 + $0x68] sm:$0xff]  ;;  %v206_v29 = vld [vmem:[#allocation7 + $0x60] sm:$0xff]  ;;  %v116_v31 = vrot.slane %v983_v9, 2 }
  0x40   :  { %vm108_vm0 = vcmp.lt.s32.totalorder %v107_v1, 7  ;;  %vm126_vm1 = vcmp.lt.s32.totalorder %v107_v1, 5  ;;  %vm117_vm2 = vcmp.lt.s32.totalorder %v107_v1, 6  ;;  %603 = vmatpush3.msra.mxu0 %v209_v10  ;;  %v125_v32 = vrot.slane %v983_v9, 3  ;;  %v205_v34 = vld [vmem:[#allocation7 + $0x58] sm:$0xff]  ;;  %v204_v39 = vld [vmem:[#allocation7 + $0x50] sm:$0xff] }
  0x41   :  { %v110_v16 = vsel %vm108_vm0, %v103_v6, %v104_v7  ;;  %v111_v17 = vsel %vm108_vm0, %v102_v5, %v103_v6  ;;  %v128_v22 = vsel %vm126_vm1, %v123_v11, %v124_v12  ;;  %v129_v23 = vsel %vm126_vm1, %v122_v8, %v123_v11  ;;  %604 = vmatprep.subr.mxu0 %v208_v15  ;;  %v343_v41 = vld [vmem:[#allocation8 + $0x78] sm:$0xff]  ;;  %s895_s29 = smov 64   ;;  %v203_v44 = vld [vmem:[#allocation7 + $0x48] sm:$0xff]  ;;  %v202_v45 = vld [vmem:[#allocation7 + $0x40] sm:$0xff]  ;;  %s897_s13 = smov [#allocation11]  }
  0x42   :  { %v723_v21 = vpack.i.bf16 %v110_v16, %v111_v17  ;;  %v120_v24 = vsel %vm117_vm2, %v113_v13, %v114_v14  ;;  %v733_v25 = vpack.i.bf16 %v128_v22, %v129_v23  ;;  %v119_v26 = vsel %vm117_vm2, %v114_v14, %v115_v18  ;;  %605 = vmatpush3.msra.mxu0 %v208_v15  ;;  %v342_v46 = vld [vmem:[#allocation8 + $0x70] sm:$0xff]  ;;  %v201_v47 = vld [vmem:[#allocation7 + $0x38] sm:$0xff]  ;;  %v199_v49 = vld [vmem:[#allocation7 + $0x28] sm:$0xff]  ;;  %s533_s14 = sshll.u32 %s897_s13, 4  ;;  %s534_s14 = int_to_ptr.vmem [resolvable:$true] %s533_s14 }
  0x43   :  { %v109_v27 = vsel %vm108_vm0, %v104_v7, %v105_v19  ;;  %v112_v28 = vsel %vm108_vm0, %v105_v19, %v102_v5  ;;  %v728_v30 = vpack.i.bf16 %v119_v26, %v120_v24  ;;  %606 = vmatprep.subr.mxu0 %v207_v20  ;;  %v118_v35 = vsel %vm117_vm2, %v115_v18, %v116_v31  ;;  %v200_v48 = vld [vmem:[#allocation7 + $0x30] sm:$0xff]  ;;  %v198_v50 = vld [vmem:[#allocation7 + $0x20] sm:$0xff]  ;;  %v197_v51 = vld [vmem:[#allocation7 + $0x18] sm:$0xff]  ;;  %p862_p12 = scmp.lt.s32.totalorder %s534_s14, %s534_s14 }
  0x44   :  { %724 = vrot.lane.b32.xlu0 %v723_v21, %s892_s2  ;;  %734 = vrot.lane.b32.xlu1 %v733_v25, %s893_s6  ;;  %v738_v33 = vpack.i.bf16 %v112_v28, %v109_v27  ;;  %v121_v36 = vsel %vm117_vm2, %v116_v31, %v113_v13  ;;  %v127_v37 = vsel %vm126_vm1, %v124_v12, %v125_v32  ;;  %v894_v40 = vmov 0.0   ;;  %v196_v52 = vld [vmem:[#allocation7 + $0x10] sm:$0xff]  ;;  %v195_v53 = vld [vmem:[#allocation7 + $0x8] sm:$0xff]  ;;  %v194_v54 = vld [vmem:[#allocation7] sm:$0xff] }
  0x45   :  { %607 = vmatpush3.msra.mxu0 %v207_v20  ;;  %v130_v38 = vsel %vm126_vm1, %v125_v32, %v122_v8  ;;  %640 = vmatprep.subr.mxu1 %v894_v40  ;;  %v743_v42 = vpack.i.bf16 %v121_v36, %v118_v35  ;;  %vm179_vm3 = vcmask 261120   ;;  %vm184_vm4 = vcmask 523264   ;;  %v341_v23 = vld [vmem:[#allocation8 + $0x68] sm:$0xff]  ;;  %v340_v24 = vld [vmem:[#allocation8 + $0x60] sm:$0xff]  ;;  %v335_v27 = vld [vmem:[#allocation8 + $0x38] sm:$0xff] }
  0x46   :  { %608 = vmatprep.subr.mxu0 %v206_v29  ;;  %v748_v43 = vpack.i.bf16 %v130_v38, %v127_v37  ;;  %641 = vmatpush3.msra.mxu1 %v343_v41  ;;  %vm189_vm5 = vcmask 785408   ;;  %v337_v25 = vld [vmem:[#allocation8 + $0x48] sm:$0xff]  ;;  %v336_v26 = vld [vmem:[#allocation8 + $0x40] sm:$0xff]  ;;  %v334_v28 = vld [vmem:[#allocation8 + $0x30] sm:$0xff]  ;;  %vm896_vm6 = vmmov 0   ;;  %vm353_vm7 = vcmask 1041409  }
  0x47   :  { %609 = vmatpush3.msra.mxu0 %v206_v29  ;;  %642 = vmatprep.subr.mxu1 %v894_v40  ;;  %v333_v29 = vld [vmem:[#allocation8 + $0x28] sm:$0xff]  ;;  %v331_v31 = vld [vmem:[#allocation8 + $0x18] sm:$0xff]  ;;  %v330_v32 = vld [vmem:[#allocation8 + $0x10] sm:$0xff] }
  0x48   :  { %729 = vrot.lane.b32.xlu0 %v728_v30, %s895_s29  ;;  %610 = vmatprep.subr.mxu0 %v205_v34  ;;  %v332_v30 = vld [vmem:[#allocation8 + $0x20] sm:$0xff]  ;;  %v442_v35 = vld [vmem:[#allocation10 + $0x78] sm:$0xff]  ;;  %v441_v36 = vld [vmem:[#allocation10 + $0x70] sm:$0xff] }
  0x49   :  { %739 = vrot.lane.b32.xlu1 %v738_v33, %s892_s2  ;;  %611 = vmatpush3.msra.mxu0 %v205_v34  ;;  %v329_v33 = vld [vmem:[#allocation8 + $0x8] sm:$0xff]  ;;  %v328_v34 = vld [vmem:[#allocation8] sm:$0xff]  ;;  %v437_v41 = vld [vmem:[#allocation10 + $0x50] sm:$0xff] }
  0x4a   :  { %612 = vmatprep.subr.mxu0 %v204_v39  ;;  %643 = vmatpush3.msra.mxu1 %v342_v46  ;;  %v440_v37 = vld [vmem:[#allocation10 + $0x68] sm:$0xff]  ;;  %v439_v38 = vld [vmem:[#allocation10 + $0x60] sm:$0xff] }
  0x4b   :  { %613 = vmatpush3.msra.mxu0 %v204_v39  ;;  %644 = vmatprep.subr.mxu1 %v894_v40  ;;  %v438_v39 = vld [vmem:[#allocation10 + $0x58] sm:$0xff]  ;;  %v432_v46 = vld [vmem:[#allocation10 + $0x28] sm:$0xff] }
  0x4c   :  { %744 = vrot.lane.b32.xlu0 %v743_v42, %s895_s29  ;;  %614 = vmatprep.subr.mxu0 %v203_v44  ;;  %v436_v42 = vld [vmem:[#allocation10 + $0x48] sm:$0xff] }
  0x4d   :  { %749 = vrot.lane.b32.xlu1 %v748_v43, %s893_s6  ;;  %615 = vmatpush3.msra.mxu0 %v203_v44  ;;  %v435_v43 = vld [vmem:[#allocation10 + $0x40] sm:$0xff]  ;;  %v434_v44 = vld [vmem:[#allocation10 + $0x38] sm:$0xff] }
  0x4e   :  { %616 = vmatprep.subr.mxu0 %v202_v45  ;;  %645 = vmatpush3.msra.mxu1 %v341_v23  ;;  %v429_v23 = vld [vmem:[#allocation10 + $0x10] sm:$0xff] }
  0x4f   :  { %617 = vmatpush3.msra.mxu0 %v202_v45  ;;  %646 = vmatprep.subr.mxu1 %v894_v40  ;;  %v433_v45 = vld [vmem:[#allocation10 + $0x30] sm:$0xff] }
  0x50   :  { %618 = vmatprep.subr.mxu0 %v201_v47  ;;  %647 = vmatpush3.msra.mxu1 %v340_v24  ;;  %v428_v24 = vld [vmem:[#allocation10 + $0x8] sm:$0xff] }
  0x51   :  { %619 = vmatpush3.msra.mxu0 %v201_v47  ;;  %648 = vmatprep.subr.mxu1 %v894_v40  ;;  %v431_v47 = vld [vmem:[#allocation10 + $0x20] sm:$0xff] }
  0x52   :  { %620 = vmatprep.subr.mxu0 %v200_v48  ;;  %672 = vmatprep.mubr.msk.f32.mxu1 %vm896_vm6, %v894_v40 }
  0x53   :  { %621 = vmatpush3.msra.mxu0 %v200_v48  ;;  %v430_v48 = vld [vmem:[#allocation10 + $0x18] sm:$0xff] }
  0x54   :  { %622 = vmatprep.subr.mxu0 %v199_v49 }
  0x55   :  { %623 = vmatpush3.msra.mxu0 %v199_v49  ;;  %v544_v49 = vld [vmem:[%s1072_s3] ss:$0 sm:$0xff] }
  0x56   :  { %624 = vmatprep.subr.mxu0 %v198_v50 }
  0x57   :  { %625 = vmatpush3.msra.mxu0 %v198_v50 }
  0x58   :  { %626 = vmatprep.subr.mxu0 %v197_v51 }
  0x59   :  { %627 = vmatpush3.msra.mxu0 %v197_v51 }
  0x5a   :  { %628 = vmatprep.subr.mxu0 %v196_v52 }
  0x5b   :  { %629 = vmatpush3.msra.mxu0 %v196_v52 }
  0x5c   :  { %630 = vmatprep.subr.mxu0 %v195_v53 }
  0x5d   :  { %631 = vmatpush3.msra.mxu0 %v195_v53 }
  0x5e   :  { %632 = vmatprep.subr.mxu0 %v194_v54 }
  0x5f   :  { %633 = vmatpush3.msra.mxu0 %v194_v54 }
  0x60   :  { %675 = vmatprep.subr.mxu0 %v894_v40 }
  0xb6   :  { %v725_v55 = vpop.permute.xlu0 %724  ;;  %v735_v56 = vpop.permute.xlu1 %734 }
  0xb7   :  { %v727_v57 = vunpack.i.h.bf16 %v725_v55  ;;  %v726_v58 = vunpack.i.l.bf16 %v725_v55  ;;  %v737_v60 = vunpack.i.h.bf16 %v735_v56  ;;  %v736_v61 = vunpack.i.l.bf16 %v735_v56  ;;  %v307_v55 = vld [vmem:[#allocation5 + $0x8] sm:$0xff]  ;;  %v306_v56 = vld [vmem:[#allocation5] sm:$0xff] }
  0xb9   :  { %v180_v6 = vsel %vm179_vm3, %v973_v2, %v726_v58  ;;  %v181_v7 = vsel %vm179_vm3, %v975_v3, %v727_v57 }
  0xba   :  { %v730_v59 = vpop.permute.xlu0 %729 }
  0xbb   :  { %v732_v62 = vunpack.i.h.bf16 %v730_v59  ;;  %v731_v63 = vunpack.i.l.bf16 %v730_v59  ;;  %v740_v0 = vpop.permute.xlu1 %739 }
  0xbc   :  { %v742_v1 = vunpack.i.h.bf16 %v740_v0  ;;  %v741_v5 = vunpack.i.l.bf16 %v740_v0 }
  0xbd   :  { %v185_v8 = vsel %vm184_vm4, %v180_v6, %v731_v63  ;;  %v186_v10 = vsel %vm184_vm4, %v181_v7, %v732_v62 }
  0xbe   :  { %v745_v11 = vpop.permute.xlu0 %744  ;;  %v190_v12 = vsel %vm189_vm5, %v185_v8, %v736_v61  ;;  %v191_v13 = vsel %vm189_vm5, %v186_v10, %v737_v60  ;;  %v182_v2 = vsel %vm179_vm3, %v977_v4, %v741_v5  ;;  %v183_v3 = vsel %vm179_vm3, %v983_v9, %v742_v1  ;;  %v339_v4 = vld [vmem:[#allocation8 + $0x58] sm:$0xff]  ;;  %v338_v9 = vld [vmem:[#allocation8 + $0x50] sm:$0xff] }
  0xbf   :  { %v747_v14 = vunpack.i.h.bf16 %v745_v11  ;;  %v746_v15 = vunpack.i.l.bf16 %v745_v11  ;;  %v750_v16 = vpop.permute.xlu1 %749  ;;  %634 = vmatprep.mubr.f32.mxu0 %v190_v12  ;;  %649 = vmatpush3.msra.mxu1 %v339_v4  ;;  %v309_v1 = vld [vmem:[#allocation5 + $0x18] sm:$0xff]  ;;  %v308_v5 = vld [vmem:[#allocation5 + $0x10] sm:$0xff]  ;;  %v427_v4 = vld [vmem:[#allocation10] sm:$0xff] }
  0xc0   :  { %v752_v17 = vunpack.i.h.bf16 %v750_v16  ;;  %v751_v18 = vunpack.i.l.bf16 %v750_v16  ;;  %635 = vmatmul.mubr.f32.vlgmr.msra.gmra.mxu0 %v191_v13  ;;  %650 = vmatprep.subr.mxu1 %v894_v40 }
  0xc1   :  { %v187_v19 = vsel %vm184_vm4, %v182_v2, %v746_v15  ;;  %v188_v20 = vsel %vm184_vm4, %v183_v3, %v747_v14  ;;  %651 = vmatpush3.msra.mxu1 %v338_v9  ;;  %676 = vmatpush3.msra.mxu0 %v442_v35  ;;  %v545_v9 = vld [vmem:[%s1074_s5] ss:$0 sm:$0xff]  ;;  %s857_s5 = scalar_lea.vmem %s534_s14, 32 }
  0xc2   :  { %v192_v21 = vsel %vm189_vm5, %v187_v19, %v751_v18  ;;  %v193_v22 = vsel %vm189_vm5, %v188_v20, %v752_v17  ;;  %652 = vmatprep.subr.mxu1 %v894_v40  ;;  %677 = vmatprep.subr.mxu0 %v894_v40  ;;  %p858_p11 = scmp.ne.s32.totalorder %s534_s14, %s857_s5  ;;  %p863_p13 = scmp.lt.s32.totalorder %s857_s5, %s857_s5 }
  0xc3   :  { %637 = vmatprep.mubr.f32.mxu0 %v192_v21  ;;  %653 = vmatpush3.msra.mxu1 %v337_v25 }
  0xc4   :  { %638 = vmatmul.mubr.f32.gmra.mxu0 %v193_v22  ;;  %654 = vmatprep.subr.mxu1 %v894_v40  ;;  %p864_p0 = por %p863_p13, %p862_p12 }
  0xc5   :  { %655 = vmatpush3.msra.mxu1 %v336_v26  ;;  %707 = vmatprep.mubr.msk.f32.mxu0 %vm896_vm6, %v894_v40 }
  0xc6   :  { %656 = vmatprep.subr.mxu1 %v894_v40  ;;  %678 = vmatpush3.msra.mxu0 %v441_v36  ;;  %p865_p1 = pnand %p864_p0, %p858_p11 }
  0xc7   :  { %657 = vmatpush3.msra.mxu1 %v335_v27  ;;  %679 = vmatprep.subr.mxu0 %v894_v40 }
  0xc8   :  { %658 = vmatprep.subr.mxu1 %v894_v40  ;;  %680 = vmatpush3.msra.mxu0 %v440_v37 }
  0xc9   :  { %659 = vmatpush3.msra.mxu1 %v334_v28  ;;  %681 = vmatprep.subr.mxu0 %v894_v40 }
  0xca   :  { %660 = vmatprep.subr.mxu1 %v894_v40  ;;  %682 = vmatpush3.msra.mxu0 %v439_v38 }
  0xcb   :  { %661 = vmatpush3.msra.mxu1 %v333_v29  ;;  %683 = vmatprep.subr.mxu0 %v894_v40  ;;  %v546_v29 = vld [vmem:[%s1076_s7] ss:$0 sm:$0xff] }
  0xcc   :  { %662 = vmatprep.subr.mxu1 %v894_v40  ;;  %684 = vmatpush3.msra.mxu0 %v438_v39 }
  0xcd   :  { %663 = vmatpush3.msra.mxu1 %v332_v30  ;;  %685 = vmatprep.subr.mxu0 %v894_v40 }
  0xce   :  { %664 = vmatprep.subr.mxu1 %v894_v40  ;;  %686 = vmatpush3.msra.mxu0 %v437_v41 }
  0xcf   :  { %665 = vmatpush3.msra.mxu1 %v331_v31  ;;  %687 = vmatprep.subr.mxu0 %v894_v40 }
  0xd0   :  { %666 = vmatprep.subr.mxu1 %v894_v40  ;;  %688 = vmatpush3.msra.mxu0 %v436_v42 }
  0xd1   :  { %667 = vmatpush3.msra.mxu1 %v330_v32  ;;  %689 = vmatprep.subr.mxu0 %v894_v40 }
  0xd2   :  { %668 = vmatprep.subr.mxu1 %v894_v40  ;;  %690 = vmatpush3.msra.mxu0 %v435_v43 }
  0xd3   :  { %669 = vmatpush3.msra.mxu1 %v329_v33  ;;  %691 = vmatprep.subr.mxu0 %v894_v40 }
  0xd4   :  { %670 = vmatprep.subr.mxu1 %v894_v40  ;;  %692 = vmatpush3.msra.mxu0 %v434_v44 }
  0xd5   :  { %671 = vmatpush3.msra.mxu1 %v328_v34  ;;  %693 = vmatprep.subr.mxu0 %v894_v40 }
  0xd6   :  { %694 = vmatpush3.msra.mxu0 %v433_v45 }
  0xd7   :  { %695 = vmatprep.subr.mxu0 %v894_v40 }
  0xd8   :  { %696 = vmatpush3.msra.mxu0 %v432_v46 }
  0xd9   :  { %697 = vmatprep.subr.mxu0 %v894_v40 }
  0xda   :  { %698 = vmatpush3.msra.mxu0 %v431_v47 }
  0xdb   :  { %699 = vmatprep.subr.mxu0 %v894_v40 }
  0xdc   :  { %700 = vmatpush3.msra.mxu0 %v430_v48 }
  0xdd   :  { %701 = vmatprep.subr.mxu0 %v894_v40 }
  0xde   :  { %702 = vmatpush3.msra.mxu0 %v429_v23 }
  0xdf   :  { %703 = vmatprep.subr.mxu0 %v894_v40 }
  0xe0   :  { %704 = vmatpush3.msra.mxu0 %v428_v24 }
  0xe1   :  { %705 = vmatprep.subr.mxu0 %v894_v40 }
  0xe2   :  { %706 = vmatpush3.msra.mxu0 %v427_v4 }
 0x180   :  { %v636_v50 = vpop.f32.mrf.mxu0 }
 0x181   :  { %v289_v51 = vadd.f32 %v636_v50, %v544_v49 }
 0x182   :  { %v283_v52 = vpop.f32.mrf.mxu0 }
 0x183   :  { %v303_v53 = vmax.f32 %v289_v51, 0.0  ;;  %v284_v54 = vadd.f32 %v544_v49, %v283_v52 }
 0x184   :  { %v639_v57 = vpop.f32.mrf.mxu0 }
 0x185   :  { %v302_v58 = vmax.f32 %v284_v54, 0.0  ;;  %v299_v59 = vadd.f32 %v639_v57, %v544_v49  ;;  %v311_v61 = vmul.f32 %v307_v55, %v303_v53 }
 0x186   :  { %v293_v60 = vpop.f32.mrf.mxu0 }
 0x187   :  { %v310_v62 = vmul.f32 %v306_v56, %v302_v58  ;;  %v305_v63 = vmax.f32 %v299_v59, 0.0  ;;  %v294_v0 = vadd.f32 %v544_v49, %v293_v60 }
 0x189   :  { %v314_v6 = vmax.f32 %v310_v62, %v311_v61  ;;  %v304_v7 = vmax.f32 %v294_v0, 0.0  ;;  %v313_v10 = vmul.f32 %v309_v1, %v305_v63 }
 0x18b   :  { %v315_v8 = vrot.slane %v314_v6, 4  ;;  %v312_v11 = vmul.f32 %v308_v5, %v304_v7 }
 0x18d   :  { %v316_v12 = vmax.f32 %v314_v6, %v315_v8  ;;  %v321_v13 = vmax.f32 %v312_v11, %v313_v10 }
 0x18f   :  { %v317_v14 = vrot.slane %v316_v12, 2  ;;  %v322_v15 = vrot.slane %v321_v13, 4 }
 0x191   :  { %v323_v16 = vmax.f32 %v321_v13, %v322_v15  ;;  %v318_v17 = vmax.f32 %v316_v12, %v317_v14 }
 0x193   :  { %v324_v18 = vrot.slane %v323_v16, 2  ;;  %v319_v2 = vrot.slane %v318_v17, 1 }
 0x195   :  { %v325_v3 = vmax.f32 %v323_v16, %v324_v18  ;;  %v320_v20 = vmax.f32 %v318_v17, %v319_v2 }
 0x197   :  { %v326_v19 = vrot.slane %v325_v3, 1 }
 0x199   :  { %v327_v21 = vmax.f32 %v325_v3, %v326_v19 }
 0x19b   :  { %v354_v22 = vsel %vm353_vm7, %v327_v21, %v320_v20 }
 0x19c   :  { %673 = vmatmul.mubr.f32.vlgmr.msra.gmra.mxu1 %v354_v22 }
 0x25c   :  { %v422_v25 = vpop.f32.mrf.mxu1 }
 0x25d   :  { %v423_v26 = vadd.f32 %v545_v9, %v422_v25 }
 0x25e   :  { %v674_v27 = vpop.f32.mrf.mxu1 }
 0x25f   :  { %v426_v28 = vmax.f32 %v423_v26, 0.0 }
 0x261   :  { %708 = vmatmul.mubr.f32.vlgmr.msra.gmra.mxu0 %v426_v28 }
 0x321   :  { %v516_v30 = vpop.f32.mrf.mxu0 }
 0x322   :  { %v517_v31 = vadd.f32 %v546_v29, %v516_v30 }
 0x323   :  { %v709_v32 = vpop.f32.mrf.mxu0 }
 0x324   :  { %v547_v33 = vmul.f32 -1.442695, %v517_v31 }
 0x326   :  { %753 = vpow2.f32 %v547_v33 }
 0x333   :  { %v754_v40 = vpop.eup %753 }
 0x334   :  { %v523_v34 = vadd.f32 1.0, %v754_v40 }
 0x336   :  { %755 = vrcp.f32 %v523_v34 }
 0x343   :  { %v756_v35 = vpop.eup %755 }
 0x344   :  { %526 = vst [vmem:[#allocation11] sm:$0x3] %v756_v35 }
 0x345   :  { %868 = shalt.err (!%p865_p1)
}
 0x346   :  { %536 = dma.vmem_to_hbm [thread:$0]  %s534_s14, 32, %s1077_s8, [#allocation4]  }
 0x347   :  { %883 = dma.done.wait [#allocation4], 32  }
 0x348   :  { %884 = vsyncadd [#allocation4], 4294967264 }
 0x349   :  { %540 = vsyncpa [#allocation3], 1 }
 0x34a   :  { %541 = vsyncpa [#allocation6], 1 }
 0x34b   :  { %542 = vsyncpa [#allocation9], 1 }
 0x34c   :  { %543 = vsyncpa [#allocation4], 1 }

</bundles_post_ra>
